<compile_context>
chip_gen: v5e
topology: v5e:2x2
jax: 0.10.0
libtpu: 0.0.40
codegen_flags: <defaults>
</compile_context>

<pallas_src>
import functools
import math

import jax
import jax.numpy as jnp
from jax.experimental import pallas as pl
from jax.experimental.pallas import tpu as pltpu

_NEG_INF = -1e30


def _flash_attn_kernel(q_ref, k_ref, v_ref, o_ref,
                       qs_sc, m_sc, l_sc, acc_sc,
                       *, scale2, hb, tk, t_valid, t_padded):
    # q_ref: (hb, C, tq), k_ref/v_ref: (hb, C, tk), o_ref: (hb, C, tq)
    ki = pl.program_id(2)

    @pl.when(ki == 0)
    def _init():
        # The q block is resident across the whole kv loop (its index_map
        # ignores ki), so scale it once per (head-block, q-tile) and cache it.
        qs_sc[...] = (q_ref[...] * scale2).astype(qs_sc.dtype)
        m_sc[...] = jnp.full_like(m_sc, _NEG_INF)
        l_sc[...] = jnp.zeros_like(l_sc)
        acc_sc[...] = jnp.zeros_like(acc_sc)

    # Mask for key columns that are zero padding (only emitted if T was padded).
    if t_valid < t_padded:
        col = ki * tk + jax.lax.broadcasted_iota(jnp.int32, (tk, 1), 0)
        kv_valid = col < t_valid                               # (tk, 1)
    else:
        kv_valid = None

    # Unrolled per-head loop: keeps the f32 (tk, tq) transients hb x smaller
    # than a batched formulation and lets EUP (exp) overlap the next head's
    # MXU score matmul.
    for h in range(hb):
        q = qs_sc[h]                                           # (C, tq)
        k = k_ref[h]                                           # (C, tk)
        v = v_ref[h]                                           # (C, tk)

        # scores[s, t] = sum_c k[c, s] * q[c, t] -> (tk, tq); contracting the
        # leading dim of both operands lowers to a single MXU push (no XLU
        # transpose of the k tile), f32 accumulation.
        s = jax.lax.dot_general(
            k, q, dimension_numbers=(((0,), (0,)), ((), ())),
            preferred_element_type=jnp.float32)
        if kv_valid is not None:
            s = jnp.where(kv_valid, s, _NEG_INF)

        # Online softmax over the kv axis (axis 0 of the (tk, tq) tile).
        m_prev = m_sc[h]                                       # (1, tq)
        m_new = jnp.maximum(m_prev, jnp.max(s, axis=0, keepdims=True))
        alpha = jnp.exp(m_prev - m_new)                        # (1, tq)
        p = jnp.exp(s - m_new)                                 # (tk, tq), f32

        l_sc[h] = alpha * l_sc[h] + jnp.sum(p, axis=0, keepdims=True)

        # acc[c, t] += sum_s v[c, s] * p[s, t] -- canonical (C,K)x(K,N) matmul.
        pv = jax.lax.dot_general(
            v, p.astype(v.dtype),
            dimension_numbers=(((1,), (0,)), ((), ())),
            preferred_element_type=jnp.float32)                # (C, tq)
        acc_sc[h] = alpha * acc_sc[h] + pv
        m_sc[h] = m_new

    @pl.when(ki == pl.num_programs(2) - 1)
    def _finalize():
        inv_l = 1.0 / l_sc[...]            # exact; runs once per output tile
        o_ref[...] = (acc_sc[...] * inv_l).astype(o_ref.dtype)


def _pick_tile(t_total, target):
    """Largest multiple of 128 that divides t_total and is <= target; the
    wrapper pads T to a multiple of 128, so this always succeeds."""
    if t_total <= target:
        return t_total
    cand = (target // 128) * 128
    while cand >= 128:
        if t_total % cand == 0:
            return cand
        cand -= 128
    return t_total


def _vmem_budget():
    """(budget for our explicit buffers, compiler vmem limit) from chip VMEM."""
    cap = 64 * 1024 * 1024                     # conservative fallback (v7x size)
    try:
        cap = int(getattr(pltpu.get_tpu_info(), "vmem_capacity_bytes", cap))
    except Exception:
        pass
    budget = int(cap * 0.55)                   # headroom for compiler scratch
    limit = int(min(cap * 0.85, 112 * 1024 * 1024))
    return budget, limit


def _pick_head_block(B, ch, tq, tk, itemsize, n_q_blocks, budget_bytes, max_hb=16):
    """Batch as many heads per grid step as fit the VMEM budget, while keeping
    the parallel grid extent >= 2 so both v7x TensorCores get work."""
    def vmem_bytes(hb):
        io = 2 * hb * ch * (2 * tq + 2 * tk) * itemsize   # dbl-buffered q,o,k,v
        qs = hb * ch * tq * itemsize                      # cached scaled-q
        acc = 4 * hb * ch * tq                            # f32 accumulator
        ml = 2 * 4 * hb * 8 * tq                          # m, l (8-sublane pad)
        trans = 3 * 4 * tk * tq                           # per-head s/p live f32
        return io + qs + acc + ml + trans

    total_parallel = B * n_q_blocks
    hb = 1
    for cand in range(2, min(B, max_hb) + 1):
        if B % cand:
            continue
        if vmem_bytes(cand) > budget_bytes:
            continue
        if total_parallel >= 2 and (B // cand) * n_q_blocks < 2:
            continue
        hb = cand
    return hb


def qkv_attention_legacy(qkv, n_heads, *, q_tile_target=512, kv_tile_target=512):
    """qkv: [N, H*3*C, T]  ->  [N, H*C, T] (matches QKVAttentionLegacy.forward)."""
    bs, width, length = qkv.shape
    assert width % (3 * n_heads) == 0
    ch = width // (3 * n_heads)
    scale2 = 1.0 / math.sqrt(ch)      # (ch ** -0.25) ** 2, folded into q once

    B = bs * n_heads
    T = length

    # Pad T up to a multiple of 128: lane-dense output stores and full MXU N.
    t_pad = ((T + 127) // 128) * 128
    if t_pad != T:
        qkv = jnp.pad(qkv, ((0, 0), (0, 0), (0, t_pad - T)))

    # Pure reshape (no data movement): width axis = (H, 3, C) row-major.
    x = qkv.reshape(B, 3, ch, t_pad)

    tq = _pick_tile(t_pad, q_tile_target)
    tk = _pick_tile(t_pad, kv_tile_target)
    n_q = t_pad // tq
    itemsize = jnp.dtype(qkv.dtype).itemsize

    budget, vmem_limit = _vmem_budget()
    hb = _pick_head_block(B, ch, tq, tk, itemsize, n_q, budget)

    grid = (B // hb, n_q, t_pad // tk)

    # Same HBM array passed three times; index maps pick the q / k / v plane.
    q_spec = pl.BlockSpec((hb, None, ch, tq), lambda b, qi, ki: (b, 0, 0, qi))
    k_spec = pl.BlockSpec((hb, None, ch, tk), lambda b, qi, ki: (b, 1, 0, ki))
    v_spec = pl.BlockSpec((hb, None, ch, tk), lambda b, qi, ki: (b, 2, 0, ki))
    o_spec = pl.BlockSpec((hb, ch, tq), lambda b, qi, ki: (b, 0, qi))

    kernel = functools.partial(
        _flash_attn_kernel, scale2=scale2, hb=hb, tk=tk,
        t_valid=T, t_padded=t_pad)

    cost = pl.CostEstimate(
        flops=4 * B * T * T * ch,
        transcendentals=B * T * T,
        bytes_accessed=(3 * B * ch * T + B * ch * T) * itemsize)

    out = pl.pallas_call(
        kernel,
        out_shape=jax.ShapeDtypeStruct((B, ch, t_pad), qkv.dtype),
        grid_spec=pltpu.PrefetchScalarGridSpec(
            num_scalar_prefetch=0,
            grid=grid,
            in_specs=[q_spec, k_spec, v_spec],
            out_specs=o_spec,
            scratch_shapes=[
                pltpu.VMEM((hb, ch, tq), qkv.dtype),     # cached scaled q
                pltpu.VMEM((hb, 1, tq), jnp.float32),    # running max
                pltpu.VMEM((hb, 1, tq), jnp.float32),    # running sum
                pltpu.VMEM((hb, ch, tq), jnp.float32),   # output accumulator
            ],
        ),
        compiler_params=pltpu.CompilerParams(
            dimension_semantics=("parallel", "parallel", "arbitrary"),
            vmem_limit_bytes=vmem_limit),
        cost_estimate=cost,
    )(x, x, x)

    if t_pad != T:
        out = out[:, :, :T]
    return out.reshape(bs, n_heads * ch, T)


def _reference(qkv, n_heads):
    bs, width, length = qkv.shape
    ch = width // (3 * n_heads)
    x = qkv.reshape(bs * n_heads, 3 * ch, length)
    q, k, v = x[:, :ch], x[:, ch:2 * ch], x[:, 2 * ch:]
    scale = 1.0 / math.sqrt(math.sqrt(ch))
    w = jnp.einsum('bct,bcs->bts', q * scale, k * scale)
    w = jax.nn.softmax(w.astype(jnp.float32), axis=-1)
    a = jnp.einsum('bts,bcs->bct', w, v.astype(jnp.float32))
    return a.reshape(bs, -1, length).astype(qkv.dtype)


if __name__ == "__main__":
    # Test 1: small shapes (N=2, H=2, C=8, T=16 -> width=48).  T is padded to
    # 128 inside the wrapper, exercising the masked-key-padding path.
    n_heads, N, C, T = 2, 2, 8, 16
    width = n_heads * 3 * C
    key = jax.random.PRNGKey(0)
    qkv = jax.random.normal(key, (N, width, T), dtype=jnp.float32)

    out = jax.block_until_ready(qkv_attention_legacy(qkv, n_heads))
    ref = _reference(qkv, n_heads)
    assert out.shape == (N, n_heads * C, T), out.shape
    err = float(jnp.max(jnp.abs(out - ref)))
    assert jnp.allclose(out, ref, atol=2e-3, rtol=2e-3), err

    # Test 2: bf16, T=256 with 128-wide tiles -> multiple kv steps, exercising
    # the online-softmax accumulation (alpha rescale, running-max) path.
    n_heads2, N2, C2, T2 = 2, 2, 8, 256
    width2 = n_heads2 * 3 * C2
    qkv2 = jax.random.normal(
        jax.random.PRNGKey(0), (N2, width2, T2), dtype=jnp.float32
    ).astype(jnp.bfloat16)

    out2 = jax.block_until_ready(
        qkv_attention_legacy(qkv2, n_heads2, q_tile_target=128, kv_tile_target=128))
    ref2 = _reference(qkv2.astype(jnp.float32), n_heads2)
    assert out2.shape == (N2, n_heads2 * C2, T2), out2.shape
    err2 = float(jnp.max(jnp.abs(out2.astype(jnp.float32) - ref2)))
    assert err2 < 5e-2, err2

    print("KERNEL_OK")
</pallas_src>

<mosaic_0001>
module attributes {stable_mosaic.version = 11 : i64} {
  func.func @_flash_attn_kernel(%arg0: i32, %arg1: i32, %arg2: i32, %arg3: memref<2x1x8x128xf32, #tpu.memory_space<vmem>>, %arg4: memref<2x1x8x128xf32, #tpu.memory_space<vmem>>, %arg5: memref<2x1x8x128xf32, #tpu.memory_space<vmem>>, %arg6: memref<2x8x128xf32, #tpu.memory_space<vmem>>, %arg7: memref<2x8x128xf32, #tpu.memory_space<vmem>>, %arg8: memref<2x1x128xf32, #tpu.memory_space<vmem>>, %arg9: memref<2x1x128xf32, #tpu.memory_space<vmem>>, %arg10: memref<2x8x128xf32, #tpu.memory_space<vmem>>) attributes {dimension_semantics = [#tpu.dimension_semantics<parallel>, #tpu.dimension_semantics<parallel>, #tpu.dimension_semantics<arbitrary>], iteration_bounds = array<i64: 2, 1, 1>, scalar_prefetch = 0 : i64, scratch_operands = 4 : i64, tpu.core_type = #tpu.core_type<tc>, window_params = [{transform_indices = @transform_0, window_bounds = array<i64: 2, 1, 8, 128>}, {transform_indices = @transform_1, window_bounds = array<i64: 2, 1, 8, 128>}, {transform_indices = @transform_2, window_bounds = array<i64: 2, 1, 8, 128>}, {transform_indices = @transform_3, window_bounds = array<i64: 2, 8, 128>}]} {
    %c0_i32 = arith.constant 0 : i32
    %0 = arith.cmpi eq, %arg2, %c0_i32 : i32
    %1 = arith.extui %0 : i1 to i32
    %c0_i32_0 = arith.constant 0 : i32
    %2 = arith.cmpi ne, %1, %c0_i32_0 : i32
    scf.if %2 {
      %c0_68 = arith.constant 0 : index
      %c0_69 = arith.constant 0 : index
      %c0_70 = arith.constant 0 : index
      %c0_71 = arith.constant 0 : index
      %96 = vector.load %arg3[%c0_68, %c0_69, %c0_70, %c0_71] : memref<2x1x8x128xf32, #tpu.memory_space<vmem>>, vector<2x1x8x128xf32>
      %97 = vector.shape_cast %96 : vector<2x1x8x128xf32> to vector<2x8x128xf32>
      %cst_72 = arith.constant 0.353553385 : f32
      %98 = vector.broadcast %cst_72 : f32 to vector<2x8x128xf32>
      %99 = arith.mulf %97, %98 : vector<2x8x128xf32>
      %c0_73 = arith.constant 0 : index
      %c0_74 = arith.constant 0 : index
      %c0_75 = arith.constant 0 : index
      %100 = vector.load %arg7[%c0_73, %c0_74, %c0_75] : memref<2x8x128xf32, #tpu.memory_space<vmem>>, vector<2x8x128xf32>
      tpu.vector_store %arg7[%c0_73, %c0_74, %c0_75], %99 {strides = array<i32>} : memref<2x8x128xf32, #tpu.memory_space<vmem>>, vector<2x8x128xf32>,
      %cst_76 = arith.constant -1.000000e+30 : f32
      %101 = vector.broadcast %cst_76 : f32 to vector<2x1x128xf32>
      %c0_77 = arith.constant 0 : index
      %c0_78 = arith.constant 0 : index
      %c0_79 = arith.constant 0 : index
      %102 = vector.load %arg8[%c0_77, %c0_78, %c0_79] : memref<2x1x128xf32, #tpu.memory_space<vmem>>, vector<2x1x128xf32>
      tpu.vector_store %arg8[%c0_77, %c0_78, %c0_79], %101 {strides = array<i32>} : memref<2x1x128xf32, #tpu.memory_space<vmem>>, vector<2x1x128xf32>,
      %cst_80 = arith.constant 0.000000e+00 : f32
      %103 = vector.broadcast %cst_80 : f32 to vector<2x1x128xf32>
      %c0_81 = arith.constant 0 : index
      %c0_82 = arith.constant 0 : index
      %c0_83 = arith.constant 0 : index
      %104 = vector.load %arg9[%c0_81, %c0_82, %c0_83] : memref<2x1x128xf32, #tpu.memory_space<vmem>>, vector<2x1x128xf32>
      tpu.vector_store %arg9[%c0_81, %c0_82, %c0_83], %103 {strides = array<i32>} : memref<2x1x128xf32, #tpu.memory_space<vmem>>, vector<2x1x128xf32>,
      %cst_84 = arith.constant 0.000000e+00 : f32
      %105 = vector.broadcast %cst_84 : f32 to vector<2x8x128xf32>
      %c0_85 = arith.constant 0 : index
      %c0_86 = arith.constant 0 : index
      %c0_87 = arith.constant 0 : index
      %106 = vector.load %arg10[%c0_85, %c0_86, %c0_87] : memref<2x8x128xf32, #tpu.memory_space<vmem>>, vector<2x8x128xf32>
      tpu.vector_store %arg10[%c0_85, %c0_86, %c0_87], %105 {strides = array<i32>} : memref<2x8x128xf32, #tpu.memory_space<vmem>>, vector<2x8x128xf32>,
    } else {
    }
    %c128_i32 = arith.constant 128 : i32
    %3 = arith.muli %arg2, %c128_i32 : i32
    %4 = tpu.iota {dimensions = array<i32: 0>} : vector<128x1xi32>
    %5 = vector.broadcast %3 : i32 to vector<128x1xi32>
    %6 = arith.addi %5, %4 : vector<128x1xi32>
    %c16_i32 = arith.constant 16 : i32
    %7 = vector.broadcast %c16_i32 : i32 to vector<128x1xi32>
    %8 = arith.cmpi slt, %6, %7 : vector<128x1xi32>
    %c0 = arith.constant 0 : index
    %c0_1 = arith.constant 0 : index
    %c0_2 = arith.constant 0 : index
    %9 = vector.load %arg7[%c0, %c0_1, %c0_2] : memref<2x8x128xf32, #tpu.memory_space<vmem>>, vector<1x8x128xf32>
    %10 = vector.shape_cast %9 : vector<1x8x128xf32> to vector<8x128xf32>
    %c0_3 = arith.constant 0 : index
    %c0_4 = arith.constant 0 : index
    %c0_5 = arith.constant 0 : index
    %c0_6 = arith.constant 0 : index
    %11 = vector.load %arg4[%c0_3, %c0_4, %c0_5, %c0_6] : memref<2x1x8x128xf32, #tpu.memory_space<vmem>>, vector<1x1x8x128xf32>
    %12 = vector.shape_cast %11 : vector<1x1x8x128xf32> to vector<8x128xf32>
    %c0_7 = arith.constant 0 : index
    %c0_8 = arith.constant 0 : index
    %c0_9 = arith.constant 0 : index
    %c0_10 = arith.constant 0 : index
    %13 = vector.load %arg5[%c0_7, %c0_8, %c0_9, %c0_10] : memref<2x1x8x128xf32, #tpu.memory_space<vmem>>, vector<1x1x8x128xf32>
    %14 = vector.shape_cast %13 : vector<1x1x8x128xf32> to vector<8x128xf32>
    %cst = arith.constant dense<0.000000e+00> : vector<128x128xf32>
    %15 = tpu.matmul %12, %10, %cst {dimension_numbers = #tpu.dot_dimension_numbers<[0], [0], [1], [1], [0, 1, 1, 1], [], []>} : vector<8x128xf32>, vector<8x128xf32>, vector<128x128xf32> -> vector<128x128xf32>
    %cst_11 = arith.constant -1.000000e+30 : f32
    %16 = vector.shape_cast %8 : vector<128x1xi1> to vector<128x1xi1>
    %17 = vector.broadcast %16 : vector<128x1xi1> to vector<128x128xi1>
    %18 = vector.broadcast %cst_11 : f32 to vector<128x128xf32>
    %19 = arith.select %17, %15, %18 : vector<128x128xi1>, vector<128x128xf32>
    %c0_12 = arith.constant 0 : index
    %c0_13 = arith.constant 0 : index
    %c0_14 = arith.constant 0 : index
    %20 = vector.load %arg8[%c0_12, %c0_13, %c0_14] : memref<2x1x128xf32, #tpu.memory_space<vmem>>, vector<1x1x128xf32>
    %21 = vector.shape_cast %20 : vector<1x1x128xf32> to vector<1x128xf32>
    %cst_15 = arith.constant dense<0xFF800000> : vector<128xf32>
    %22 = vector.multi_reduction <maximumf>, %19, %cst_15 [0] : vector<128x128xf32> to vector<128xf32>
    %23 = vector.shape_cast %22 : vector<128xf32> to vector<1x128xf32>
    %24 = arith.maximumf %21, %23 : vector<1x128xf32>
    %25 = arith.subf %21, %24 : vector<1x128xf32>
    %26 = math.exp %25 : vector<1x128xf32>
    %27 = vector.broadcast %24 : vector<1x128xf32> to vector<128x128xf32>
    %28 = arith.subf %19, %27 : vector<128x128xf32>
    %29 = math.exp %28 : vector<128x128xf32>
    %c0_16 = arith.constant 0 : index
    %c0_17 = arith.constant 0 : index
    %c0_18 = arith.constant 0 : index
    %30 = vector.load %arg9[%c0_16, %c0_17, %c0_18] : memref<2x1x128xf32, #tpu.memory_space<vmem>>, vector<1x1x128xf32>
    %31 = vector.shape_cast %30 : vector<1x1x128xf32> to vector<1x128xf32>
    %32 = arith.mulf %26, %31 : vector<1x128xf32>
    %cst_19 = arith.constant dense<0.000000e+00> : vector<128xf32>
    %33 = vector.multi_reduction <add>, %29, %cst_19 [0] : vector<128x128xf32> to vector<128xf32>
    %34 = vector.shape_cast %33 : vector<128xf32> to vector<1x128xf32>
    %35 = arith.addf %32, %34 : vector<1x128xf32>
    %c0_20 = arith.constant 0 : index
    %c0_21 = arith.constant 0 : index
    %c0_22 = arith.constant 0 : index
    %36 = vector.load %arg9[%c0_20, %c0_21, %c0_22] : memref<2x1x128xf32, #tpu.memory_space<vmem>>, vector<1x1x128xf32>
    %37 = vector.shape_cast %36 : vector<1x1x128xf32> to vector<1x128xf32>
    %38 = vector.shape_cast %35 : vector<1x128xf32> to vector<1x1x128xf32>
    tpu.vector_store %arg9[%c0_20, %c0_21, %c0_22], %38 {strides = array<i32>} : memref<2x1x128xf32, #tpu.memory_space<vmem>>, vector<1x1x128xf32>,
    %cst_23 = arith.constant dense<0.000000e+00> : vector<8x128xf32>
    %39 = tpu.matmul %14, %29, %cst_23 {dimension_numbers = #tpu.dot_dimension_numbers<[1], [0], [0], [1], [0, 0, 1, 1], [], []>} : vector<8x128xf32>, vector<128x128xf32>, vector<8x128xf32> -> vector<8x128xf32>
    %c0_24 = arith.constant 0 : index
    %c0_25 = arith.constant 0 : index
    %c0_26 = arith.constant 0 : index
    %40 = vector.load %arg10[%c0_24, %c0_25, %c0_26] : memref<2x8x128xf32, #tpu.memory_space<vmem>>, vector<1x8x128xf32>
    %41 = vector.shape_cast %40 : vector<1x8x128xf32> to vector<8x128xf32>
    %42 = vector.broadcast %26 : vector<1x128xf32> to vector<8x128xf32>
    %43 = arith.mulf %42, %41 : vector<8x128xf32>
    %44 = arith.addf %43, %39 : vector<8x128xf32>
    %c0_27 = arith.constant 0 : index
    %c0_28 = arith.constant 0 : index
    %c0_29 = arith.constant 0 : index
    %45 = vector.load %arg10[%c0_27, %c0_28, %c0_29] : memref<2x8x128xf32, #tpu.memory_space<vmem>>, vector<1x8x128xf32>
    %46 = vector.shape_cast %45 : vector<1x8x128xf32> to vector<8x128xf32>
    %47 = vector.shape_cast %44 : vector<8x128xf32> to vector<1x8x128xf32>
    tpu.vector_store %arg10[%c0_27, %c0_28, %c0_29], %47 {strides = array<i32>} : memref<2x8x128xf32, #tpu.memory_space<vmem>>, vector<1x8x128xf32>,
    %c0_30 = arith.constant 0 : index
    %c0_31 = arith.constant 0 : index
    %c0_32 = arith.constant 0 : index
    %48 = vector.load %arg8[%c0_30, %c0_31, %c0_32] : memref<2x1x128xf32, #tpu.memory_space<vmem>>, vector<1x1x128xf32>
    %49 = vector.shape_cast %48 : vector<1x1x128xf32> to vector<1x128xf32>
    %50 = vector.shape_cast %24 : vector<1x128xf32> to vector<1x1x128xf32>
    tpu.vector_store %arg8[%c0_30, %c0_31, %c0_32], %50 {strides = array<i32>} : memref<2x1x128xf32, #tpu.memory_space<vmem>>, vector<1x1x128xf32>,
    %c1 = arith.constant 1 : index
    %c0_33 = arith.constant 0 : index
    %c0_34 = arith.constant 0 : index
    %51 = vector.load %arg7[%c1, %c0_33, %c0_34] : memref<2x8x128xf32, #tpu.memory_space<vmem>>, vector<1x8x128xf32>
    %52 = vector.shape_cast %51 : vector<1x8x128xf32> to vector<8x128xf32>
    %c1_35 = arith.constant 1 : index
    %c0_36 = arith.constant 0 : index
    %c0_37 = arith.constant 0 : index
    %c0_38 = arith.constant 0 : index
    %53 = vector.load %arg4[%c1_35, %c0_36, %c0_37, %c0_38] : memref<2x1x8x128xf32, #tpu.memory_space<vmem>>, vector<1x1x8x128xf32>
    %54 = vector.shape_cast %53 : vector<1x1x8x128xf32> to vector<8x128xf32>
    %c1_39 = arith.constant 1 : index
    %c0_40 = arith.constant 0 : index
    %c0_41 = arith.constant 0 : index
    %c0_42 = arith.constant 0 : index
    %55 = vector.load %arg5[%c1_39, %c0_40, %c0_41, %c0_42] : memref<2x1x8x128xf32, #tpu.memory_space<vmem>>, vector<1x1x8x128xf32>
    %56 = vector.shape_cast %55 : vector<1x1x8x128xf32> to vector<8x128xf32>
    %cst_43 = arith.constant dense<0.000000e+00> : vector<128x128xf32>
    %57 = tpu.matmul %54, %52, %cst_43 {dimension_numbers = #tpu.dot_dimension_numbers<[0], [0], [1], [1], [0, 1, 1, 1], [], []>} : vector<8x128xf32>, vector<8x128xf32>, vector<128x128xf32> -> vector<128x128xf32>
    %cst_44 = arith.constant -1.000000e+30 : f32
    %58 = vector.shape_cast %8 : vector<128x1xi1> to vector<128x1xi1>
    %59 = vector.broadcast %58 : vector<128x1xi1> to vector<128x128xi1>
    %60 = vector.broadcast %cst_44 : f32 to vector<128x128xf32>
    %61 = arith.select %59, %57, %60 : vector<128x128xi1>, vector<128x128xf32>
    %c1_45 = arith.constant 1 : index
    %c0_46 = arith.constant 0 : index
    %c0_47 = arith.constant 0 : index
    %62 = vector.load %arg8[%c1_45, %c0_46, %c0_47] : memref<2x1x128xf32, #tpu.memory_space<vmem>>, vector<1x1x128xf32>
    %63 = vector.shape_cast %62 : vector<1x1x128xf32> to vector<1x128xf32>
    %cst_48 = arith.constant dense<0xFF800000> : vector<128xf32>
    %64 = vector.multi_reduction <maximumf>, %61, %cst_48 [0] : vector<128x128xf32> to vector<128xf32>
    %65 = vector.shape_cast %64 : vector<128xf32> to vector<1x128xf32>
    %66 = arith.maximumf %63, %65 : vector<1x128xf32>
    %67 = arith.subf %63, %66 : vector<1x128xf32>
    %68 = math.exp %67 : vector<1x128xf32>
    %69 = vector.broadcast %66 : vector<1x128xf32> to vector<128x128xf32>
    %70 = arith.subf %61, %69 : vector<128x128xf32>
    %71 = math.exp %70 : vector<128x128xf32>
    %c1_49 = arith.constant 1 : index
    %c0_50 = arith.constant 0 : index
    %c0_51 = arith.constant 0 : index
    %72 = vector.load %arg9[%c1_49, %c0_50, %c0_51] : memref<2x1x128xf32, #tpu.memory_space<vmem>>, vector<1x1x128xf32>
    %73 = vector.shape_cast %72 : vector<1x1x128xf32> to vector<1x128xf32>
    %74 = arith.mulf %68, %73 : vector<1x128xf32>
    %cst_52 = arith.constant dense<0.000000e+00> : vector<128xf32>
    %75 = vector.multi_reduction <add>, %71, %cst_52 [0] : vector<128x128xf32> to vector<128xf32>
    %76 = vector.shape_cast %75 : vector<128xf32> to vector<1x128xf32>
    %77 = arith.addf %74, %76 : vector<1x128xf32>
    %c1_53 = arith.constant 1 : index
    %c0_54 = arith.constant 0 : index
    %c0_55 = arith.constant 0 : index
    %78 = vector.load %arg9[%c1_53, %c0_54, %c0_55] : memref<2x1x128xf32, #tpu.memory_space<vmem>>, vector<1x1x128xf32>
    %79 = vector.shape_cast %78 : vector<1x1x128xf32> to vector<1x128xf32>
    %80 = vector.shape_cast %77 : vector<1x128xf32> to vector<1x1x128xf32>
    tpu.vector_store %arg9[%c1_53, %c0_54, %c0_55], %80 {strides = array<i32>} : memref<2x1x128xf32, #tpu.memory_space<vmem>>, vector<1x1x128xf32>,
    %cst_56 = arith.constant dense<0.000000e+00> : vector<8x128xf32>
    %81 = tpu.matmul %56, %71, %cst_56 {dimension_numbers = #tpu.dot_dimension_numbers<[1], [0], [0], [1], [0, 0, 1, 1], [], []>} : vector<8x128xf32>, vector<128x128xf32>, vector<8x128xf32> -> vector<8x128xf32>
    %c1_57 = arith.constant 1 : index
    %c0_58 = arith.constant 0 : index
    %c0_59 = arith.constant 0 : index
    %82 = vector.load %arg10[%c1_57, %c0_58, %c0_59] : memref<2x8x128xf32, #tpu.memory_space<vmem>>, vector<1x8x128xf32>
    %83 = vector.shape_cast %82 : vector<1x8x128xf32> to vector<8x128xf32>
    %84 = vector.broadcast %68 : vector<1x128xf32> to vector<8x128xf32>
    %85 = arith.mulf %84, %83 : vector<8x128xf32>
    %86 = arith.addf %85, %81 : vector<8x128xf32>
    %c1_60 = arith.constant 1 : index
    %c0_61 = arith.constant 0 : index
    %c0_62 = arith.constant 0 : index
    %87 = vector.load %arg10[%c1_60, %c0_61, %c0_62] : memref<2x8x128xf32, #tpu.memory_space<vmem>>, vector<1x8x128xf32>
    %88 = vector.shape_cast %87 : vector<1x8x128xf32> to vector<8x128xf32>
    %89 = vector.shape_cast %86 : vector<8x128xf32> to vector<1x8x128xf32>
    tpu.vector_store %arg10[%c1_60, %c0_61, %c0_62], %89 {strides = array<i32>} : memref<2x8x128xf32, #tpu.memory_space<vmem>>, vector<1x8x128xf32>,
    %c1_63 = arith.constant 1 : index
    %c0_64 = arith.constant 0 : index
    %c0_65 = arith.constant 0 : index
    %90 = vector.load %arg8[%c1_63, %c0_64, %c0_65] : memref<2x1x128xf32, #tpu.memory_space<vmem>>, vector<1x1x128xf32>
    %91 = vector.shape_cast %90 : vector<1x1x128xf32> to vector<1x128xf32>
    %92 = vector.shape_cast %66 : vector<1x128xf32> to vector<1x1x128xf32>
    tpu.vector_store %arg8[%c1_63, %c0_64, %c0_65], %92 {strides = array<i32>} : memref<2x1x128xf32, #tpu.memory_space<vmem>>, vector<1x1x128xf32>,
    %c0_i32_66 = arith.constant 0 : i32
    %93 = arith.cmpi eq, %arg2, %c0_i32_66 : i32
    %94 = arith.extui %93 : i1 to i32
    %c0_i32_67 = arith.constant 0 : i32
    %95 = arith.cmpi ne, %94, %c0_i32_67 : i32
    scf.if %95 {
      %c0_68 = arith.constant 0 : index
      %c0_69 = arith.constant 0 : index
      %c0_70 = arith.constant 0 : index
      %96 = vector.load %arg9[%c0_68, %c0_69, %c0_70] : memref<2x1x128xf32, #tpu.memory_space<vmem>>, vector<2x1x128xf32>
      %cst_71 = arith.constant 1.000000e+00 : f32
      %97 = vector.broadcast %cst_71 : f32 to vector<2x1x128xf32>
      %98 = arith.divf %97, %96 : vector<2x1x128xf32>
      %c0_72 = arith.constant 0 : index
      %c0_73 = arith.constant 0 : index
      %c0_74 = arith.constant 0 : index
      %99 = vector.load %arg10[%c0_72, %c0_73, %c0_74] : memref<2x8x128xf32, #tpu.memory_space<vmem>>, vector<2x8x128xf32>
      %100 = vector.broadcast %98 : vector<2x1x128xf32> to vector<2x8x128xf32>
      %101 = arith.mulf %99, %100 : vector<2x8x128xf32>
      %c0_75 = arith.constant 0 : index
      %c0_76 = arith.constant 0 : index
      %c0_77 = arith.constant 0 : index
      %102 = vector.load %arg6[%c0_75, %c0_76, %c0_77] : memref<2x8x128xf32, #tpu.memory_space<vmem>>, vector<2x8x128xf32>
      tpu.vector_store %arg6[%c0_75, %c0_76, %c0_77], %101 {strides = array<i32>} : memref<2x8x128xf32, #tpu.memory_space<vmem>>, vector<2x8x128xf32>,
    } else {
    }
    return
  }
  func.func @transform_0(%arg0: i32, %arg1: i32, %arg2: i32) -> (i32, i32, i32, i32) {
    %c0_i32 = arith.constant 0 : i32
    %c0_i32_0 = arith.constant 0 : i32
    %c0_i32_1 = arith.constant 0 : i32
    return %arg0, %c0_i32, %c0_i32_0, %arg1 : i32, i32, i32, i32
  }
  func.func @transform_1(%arg0: i32, %arg1: i32, %arg2: i32) -> (i32, i32, i32, i32) {
    %c1_i32 = arith.constant 1 : i32
    %c0_i32 = arith.constant 0 : i32
    %c0_i32_0 = arith.constant 0 : i32
    return %arg0, %c1_i32, %c0_i32, %arg2 : i32, i32, i32, i32
  }
  func.func @transform_2(%arg0: i32, %arg1: i32, %arg2: i32) -> (i32, i32, i32, i32) {
    %c2_i32 = arith.constant 2 : i32
    %c0_i32 = arith.constant 0 : i32
    %c0_i32_0 = arith.constant 0 : i32
    return %arg0, %c2_i32, %c0_i32, %arg2 : i32, i32, i32, i32
  }
  func.func @transform_3(%arg0: i32, %arg1: i32, %arg2: i32) -> (i32, i32, i32) {
    %c0_i32 = arith.constant 0 : i32
    %c0_i32_0 = arith.constant 0 : i32
    return %arg0, %c0_i32, %arg1 : i32, i32, i32
  }
}

</mosaic_0001>

<bundles_post_ra>
// kernel: tpu_custom_call.1
= control target key start
LH: loop header
LB: loop body
LE: loop exit
PB: predicated region body
PF: predicated region fallthrough
CT: control target
= control target key end

     0   :  { %s1791_s0 = inlined_call_operand.hbm [shape: f32[4,3,8,128], index: 0, kind: input, shape index: {}]   ;;  %s1792_s1 = inlined_call_operand.hbm [shape: f32[4,3,8,128], index: 1, kind: input, shape index: {}]   ;;  %s1793_s2 = inlined_call_operand.hbm [shape: f32[4,3,8,128], index: 2, kind: input, shape index: {}]   ;;  %s1794_s3 = inlined_call_operand.hbm [shape: f32[4,8,128], index: 3, kind: output, shape index: {}]  }
   0x1   :  { %1802 = sst [smem:[#allocation23_spill]] %s1792_s1 }
   0x2   :  { %8 = vsyncpa [#allocation7], 0 }
   0x3   :  { %10 = vsyncpa [#allocation7 + $0x1], 0 }
   0x4   :  { %11 = vsyncpa [#allocation10], 0 }
   0x5   :  { %13 = vsyncpa [#allocation10 + $0x1], 0 }
   0x6   :  { %14 = vsyncpa [#allocation8], 0 }
   0x7   :  { %16 = vsyncpa [#allocation8 + $0x1], 0  ;;  %s1570_s12 = smov 0   ;;  %s1572_s13 = smov 0  }
   0x8   :  { %s1574_s14 = smov 0   ;;  %s1576_s15 = smov 0  }
   0x9   :  { %s1578_s16 = smov 0   ;;  %s1580_s17 = smov 0  }
   0xa LB: > { %1803 = sst [smem:[#allocation16_spill]] %s1521_s12  ;;  %s1601_s18 = sadd.s32 4294967295, %s1541_s17   ;;  %s1541_s17 = sphi %s1580_s17, %s22_s17   ;;  %s1537_s16 = sphi %s1578_s16, %s1823_s16   ;;  %s1533_s15 = sphi %s1576_s15, %s1822_s15   ;;  %s1529_s14 = sphi %s1574_s14, %s1821_s14   ;;  %s1525_s13 = sphi %s1572_s13, %s1825_s13   ;;  %s1521_s12 = sphi %s1570_s12, %s1824_s12  }
   0xb   : > { %1804 = sst [smem:[#allocation17_spill]] %s1529_s14  ;;  %s1207_s19 = sadd.s32 4294967294, %s1541_s17  }
   0xc   : > { %1805 = sst [smem:[#allocation18_spill]] %s1537_s16  ;;  %s41_s20 = sadd.s32 1, %s1537_s16 }
   0xd   : > { %1806 = sst [smem:[#allocation19_spill]] %s1541_s17  ;;  %s50_s21 = sadd.s32 1, %s1529_s14 }
   0xe   : > { %p43_p0 = scmp.ge.s32.totalorder %s41_s20, 2  ;;  %p57_p1 = scmp.ne.s32.totalorder %s1529_s14, %s1525_s13 }
   0xf   : > { %p58_p2 = scmp.eq.s32.totalorder %s1541_s17, 0  ;;  %p63_p3 = scmp.ne.s32.totalorder %s1525_s13, %s1521_s12 }
  0x10   : > { %s1827_s20 = smov (%p43_p0, %s41_s20), 0  ;;  %p64_p5 = scmp.eq.s32.totalorder %s1601_s18, 0 }
  0x11   : > { %1807 = sst [smem:[#allocation20_spill]] %s1827_s20  ;;  %p1613_p4 = por %p58_p2, %p57_p1 }
  0x12   : > { %s45_s23 = ssub.s32 %s1537_s16, %s1827_s20  ;;  %p145_p6 = scmp.eq.s32.totalorder %s1601_s18, 1 }
  0x13   : > { %p48_p7 = scmp.eq.s32.totalorder %s45_s23, 0  ;;  %p1621_p8 = por %p64_p5, %p63_p3 }
  0x14   : > { %p1625_p9 = por %p145_p6, %p57_p1  ;;  %p151_p10 = scmp.eq.s32.totalorder %s1207_s19, 1 }
  0x15   : > { %s1630_s26 = scalar_select %p48_p7, %s1529_s14, %s50_s21  }
  0x16   : > { %p1632_p11 = por %p151_p10, %p63_p3  ;;  %p1209_p12 = scmp.ge.s32.totalorder %s1541_s17, 2 }
  0x17   : > { %1811 = sst [smem:[#allocation21_spill]] %s1630_s26  ;;  %p1288_p13 = scmp.lt.s32.totalorder %s1541_s17, 2 }
  0x18   : > { %s1812_s27 = scalar_select %p1632_p11, 1, 0 }
  0x19   : > { %s171_s28 = sand.u32 1, %s1529_s14   ;;  %s1642_s30 = smul.u32 48, %s1537_s16 }
  0x1a   : > { %1813 = sst [smem:[#allocation22_spill]] %s1812_s27  ;;  %s1639_s29 = sshll.u32 %s171_s28, 4 }
  0x1b   : > { %p1646_p0 = pnand %p1288_p13, %p1613_p4  ;;  %s195_s5 = sand.u32 1, %s1541_s17  }
  0x1c   : > { %s1815_s1 = sld [smem:[#allocation23_spill]]  ;;  %s199_s9 = scalar_lea.vmem [#allocation9], %s1639_s29 }
  0x1d   : > { %s210_s10 = sshll.u32 %s199_s9, 4  ;;  %p1218_p1 = scmp.ge.s32.totalorder %s1541_s17, 1  ;;  %s211_s10 = int_to_ptr.vmem [resolvable:$true] %s210_s10 }
  0x1e   : > { %p243_p2 = scmp.lt.s32.totalorder %s1541_s17, 3  ;;  %s196_s21 = scalar_lea.sflag [#allocation10], %s195_s5 }
  0x1f   : > { %s1543_s22 = smov 384   ;;  %s1544_s23 = smov 128  }
  0x20   : > { %s1545_s20 = smov 8   ;;  %p1660_p3 = pnand %p1218_p1, %p243_p2 }
  0x21   : > { %s182_s9 = scalar_lea.hbm %s1791_s0, %s1642_s30  ;;  %s172_s5 = scalar_lea.sflag [#allocation7], %s171_s28 }
  0x22   : > { %s1112_s8 = scalar_lea.hbm %s1815_s1, %s1642_s30  ;;  %s175_s1 = scalar_lea.vmem [#allocation6], %s1639_s29 }
  0x23   : > { %s1113_s11 = scalar_lea.hbm %s1112_s8, 8  ;;  %s185_s16 = sshll.u32 %s175_s1, 4  ;;  %s186_s16 = int_to_ptr.vmem [resolvable:$true] %s185_s16 }
  0x24   : > { %s208_s19 = sshll.u32 %s1113_s11, 4  ;;  %s183_s11 = sshll.u32 %s182_s9, 4  ;;  %s209_s19 = int_to_ptr.hbm [resolvable:$true] %s208_s19  ;;  %s184_s11 = int_to_ptr.hbm [resolvable:$true] %s183_s11 }
  0x25   : > { %1280 = dma.hbm_to_vmem [thread:$0]  (!%p1646_p0), %s209_s19, 256, %s211_s10, %s196_s21, %s1543_s22, %s1544_s23, %s1545_s20  }
  0x26   : > { %1277 = dma.hbm_to_vmem [thread:$0]  (!%p1646_p0), %s184_s11, 256, %s186_s16, %s172_s5, %s1543_s22, %s1544_s23, %s1545_s20  }
  0x27   : > { %s1120_s10 = scalar_lea.hbm %s1793_s2, %s1642_s30  ;;  %s224_s17 = scalar_lea.vmem [#allocation11], %s1639_s29 }
  0x28   : > { %s1121_s19 = scalar_lea.hbm %s1120_s10, 16  ;;  %s235_s27 = sshll.u32 %s224_s17, 4  ;;  %s236_s27 = int_to_ptr.vmem [resolvable:$true] %s235_s27 }
  0x29   : > { %s233_s12 = sshll.u32 %s1121_s19, 4  ;;  %247 = sbr.rel (%p1660_p3) target bundleno = 681 (0x2a9), region = 32  ;;  %s234_s12 = int_to_ptr.hbm [resolvable:$true] %s233_s12 }
  0x2a   : > { %1283 = dma.hbm_to_vmem [thread:$0]  (!%p1646_p0), %s234_s12, 256, %s236_s27, %s196_s21, %s1543_s22, %s1544_s23, %s1545_s20  }
  0x2b   : > { %s1681_s1 = sand.u32 (!%p1660_p3), 1, %s1525_s13  }
  0x2c   : > { %s1684_s16 = sshll.u32 (!%p1660_p3), %s1681_s1, 4  ;;  %s250_s14 = scalar_lea.sflag (!%p1660_p3), [#allocation7], %s1681_s1 }
  0x2d   : > { %s253_s26 = scalar_lea.vmem (!%p1660_p3), [#allocation6], %s1684_s16 }
  0x2e   : > { %1508 = dma.done.wait (%p1621_p8), %s250_s14, 256  }
  0x2f   : > { %1510 = vsyncadd (%p1621_p8), %s250_s14, 4294967040  ;;  %s259_s12 = sand.u32 1, %s1601_s18   ;;  %s263_s20 = scalar_lea.vmem [#allocation9], %s1684_s16 }
  0x30   : > { %s260_s17 = scalar_lea.sflag [#allocation10], %s259_s12 }
  0x31   : > { %1512 = dma.done.wait (%p1621_p8), %s260_s17, 512  }
  0x32   : > { %1514 = vsyncadd (%p1621_p8), %s260_s17, 4294966784  ;;  %v1239_v0 = vld [vmem:[%s263_s20 + $0x8] sm:$0xff]  ;;  %v379_v1 = vld [vmem:[%s263_s20] sm:$0xff]  ;;  %vm413_vm0 = vcmask 64512   ;;  %v1546_v20 = vmov -1e+30  }
  0x33   : > { %711 = vxpose.xlu0.b32.start.end [1/1] (short) %v1239_v0, 128  ;;  %v316_v2 = vld [vmem:[%s253_s26 + $0x8] sm:$0xff]  ;;  %v315_v16 = vld [vmem:[%s253_s26] sm:$0xff]  ;;  %322 = vst [vmem:[#allocation3 + $0x1] sm:$0x1] %v1546_v20  ;;  %v1547_v27 = vmov 0.0   ;;  %s273_s18 = scalar_lea.vmem [#allocation11], %s1684_s16 }
  0x34   : > { %v318_v3 = vmul.f32 0.35355338, %v316_v2  ;;  %v317_v17 = vmul.f32 0.35355338, %v315_v16  ;;  %321 = vst [vmem:[#allocation3] sm:$0x1] %v1546_v20 }
  0x35   : > { %324 = vst [vmem:[#allocation4 + $0x1] sm:$0x1] %v1547_v27  ;;  %s1748_s24 = scalar_lea.vmem [#allocation12], %s1684_s16  ;;  %s1262_s27 = sshll.u32 %s1533_s15, 4 }
  0x36   : > { %806 = vmatpush.msra.mxu2 %v318_v3  ;;  %1264 = vmatpush.msra.mxu3 %v318_v3  ;;  %323 = vst [vmem:[#allocation4] sm:$0x1] %v1547_v27  ;;  %s1065_s30 = scalar_lea.hbm %s1794_s3, %s1262_s27  ;;  %s1066_s4 = sshll.u32 %s1748_s24, 4  ;;  %s1067_s4 = int_to_ptr.vmem [resolvable:$true] %s1066_s4 }
  0x37   : > { %477 = vmatpush.msra.mxu0 %v317_v17  ;;  %1263 = vmatpush.msra.mxu1 %v317_v17  ;;  %v1240_v17 = vld [vmem:[%s273_s18 + $0x8] sm:$0xff]  ;;  %s1068_s21 = sshll.u32 %s1065_s30, 4  ;;  %s1053_s15 = scalar_lea.sflag [#allocation8], %s1681_s1  ;;  %s1069_s21 = int_to_ptr.hbm [resolvable:$true] %s1068_s21 }
  0x38   : > { %s1469_s22 = sshra.s32 %s1069_s21, 4  ;;  %s1475_s8 = scalar_lea.hbm %s1794_s3, 32  ;;  %s1470_s22 = int_to_ptr.hbm [resolvable:$true] %s1469_s22 }
  0x39   : > { %s1471_s23 = scalar_lea.hbm %s1470_s22, 16  ;;  %p1476_p7 = scmp.lt.s32.totalorder %s1470_s22, %s1794_s3 }
  0x3a   : > { %v1720_v43 = vld [vmem:[#allocation3 + $0x1] sm:$0x1]  ;;  %p1472_p4 = scmp.ne.s32.totalorder %s1470_s22, %s1471_s23  ;;  %p1477_p8 = scmp.lt.s32.totalorder %s1475_s8, %s1471_s23 }
  0x3c   : > { %v951_v27 = vld [vmem:[#allocation4 + $0x1] sm:$0x1]  ;;  %p1473_p5 = pnand %p1472_p4, %p1625_p9  ;;  %p1478_p10 = por %p1477_p8, %p1476_p7 }
  0x3e   : > { %p1474_p6 = pneg %p1473_p5 }
  0x40   : > { %p1479_p13 = pnand %p1478_p10, %p1474_p6 }
  0xb3   : > { %381 = vxpose.xlu0.b32.start.end [1/1] (short) %v379_v1, 128 }
  0xd7   : > { %v727_v4 = vpop.trf.xlu0 }
  0xd8   : > { %1241 = vmatmul.msk.f32.vlgmr.msra.gmra.mxu2 %vm413_vm0, %v727_v4 }
  0xdf   : > { %v728_v5 = vpop.trf.xlu0 }
  0xe0   : > { %1242 = vmatmul.msk.f32.gmra.mxu2 %vm413_vm0, %v728_v5 }
  0xe7   : > { %v729_v6 = vpop.trf.xlu0 }
  0xe8   : > { %1243 = vmatmul.msk.f32.gmra.mxu2 %vm413_vm0, %v729_v6 }
  0xef   : > { %v730_v7 = vpop.trf.xlu0 }
  0xf0   : > { %1244 = vmatmul.msk.f32.gmra.mxu2 %vm413_vm0, %v730_v7 }
  0xf7   : > { %v731_v8 = vpop.trf.xlu0 }
  0xf8   : > { %1245 = vmatmul.msk.f32.gmra.mxu2 %vm413_vm0, %v731_v8 }
  0xff   : > { %v732_v9 = vpop.trf.xlu0 }
 0x100   : > { %1246 = vmatmul.msk.f32.gmra.mxu2 %vm413_vm0, %v732_v9 }
 0x107   : > { %v733_v10 = vpop.trf.xlu0 }
 0x108   : > { %1247 = vmatmul.msk.f32.gmra.mxu2 %vm413_vm0, %v733_v10 }
 0x10f   : > { %v734_v11 = vpop.trf.xlu0 }
 0x110   : > { %1248 = vmatmul.msk.f32.gmra.mxu2 %vm413_vm0, %v734_v11 }
 0x117   : > { %v735_v12 = vpop.trf.xlu0 }
 0x118   : > { %1249 = vmatmul.msk.f32.gmra.mxu2 %vm413_vm0, %v735_v12 }
 0x11f   : > { %v736_v13 = vpop.trf.xlu0 }
 0x120   : > { %1250 = vmatmul.msk.f32.vlgmr.msra.gmra.mxu3 %vm413_vm0, %v736_v13 }
 0x127   : > { %v737_v14 = vpop.trf.xlu0 }
 0x128   : > { %1251 = vmatmul.msk.f32.gmra.mxu3 %vm413_vm0, %v737_v14 }
 0x12f   : > { %v738_v15 = vpop.trf.xlu0 }
 0x130   : > { %1252 = vmatmul.msk.f32.gmra.mxu3 %vm413_vm0, %v738_v15 }
 0x137   : > { %v739_v18 = vpop.trf.xlu0 }
 0x138   : > { %1253 = vmatmul.msk.f32.gmra.mxu3 %vm413_vm0, %v739_v18 }
 0x13f   : > { %v740_v19 = vpop.trf.xlu0 }
 0x140   : > { %1254 = vmatmul.msk.f32.gmra.mxu3 %vm413_vm0, %v740_v19 }
 0x147   : > { %v741_v21 = vpop.trf.xlu0 }
 0x148   : > { %1255 = vmatmul.msk.f32.gmra.mxu3 %vm413_vm0, %v741_v21 }
 0x14f   : > { %v742_v22 = vpop.trf.xlu0 }
 0x150   : > { %1256 = vmatmul.msk.f32.gmra.mxu3 %vm413_vm0, %v742_v22 }
 0x157   : > { %v397_v23 = vpop.trf.xlu0 }
 0x158   : > { %1223 = vmatmul.msk.f32.vlgmr.msra.gmra.mxu0 %vm413_vm0, %v397_v23 }
 0x15b   : > { %v808_v24 = vpop.f32.mrf.mxu2 }
 0x15c   : > { %v874_v26 = vmax.f32 %v808_v24, -1e+30 }
 0x15e   : > { %v878_v29 = vmax.f32 %v874_v26, -1e+30 }
 0x15f   : > { %v398_v25 = vpop.trf.xlu0 }
 0x160   : > { %1224 = vmatmul.msk.f32.gmra.mxu0 %vm413_vm0, %v398_v25  ;;  %v882_v32 = vmax.f32 %v878_v29, -1e+30 }
 0x163   : > { %v811_v28 = vpop.f32.mrf.mxu2 }
 0x164   : > { %v875_v30 = vmax.f32 %v811_v28, -1e+30 }
 0x166   : > { %v879_v31 = vmax.f32 %v875_v30, -1e+30 }
 0x167   : > { %v399_v60 = vpop.trf.xlu0 }
 0x168   : > { %v883_v33 = vmax.f32 %v879_v31, -1e+30  ;;  %1225 = vmatmul.msk.f32.gmra.mxu0 %vm413_vm0, %v399_v60 }
 0x16a   : > { %v886_v34 = vmax.f32 %v882_v32, %v883_v33 }
 0x16b   : > { %v814_v35 = vpop.f32.mrf.mxu2 }
 0x16c   : > { %v888_v36 = vmax.f32 %v886_v34, -1e+30 }
 0x16e   : > { %v889_v37 = vrot.slane %v888_v36, 4 }
 0x16f   : > { %v400_v2 = vpop.trf.xlu0 }
 0x170   : > { %v890_v38 = vmax.f32 %v888_v36, %v889_v37  ;;  %1226 = vmatmul.msk.f32.gmra.mxu0 %vm413_vm0, %v400_v2 }
 0x172   : > { %v891_v39 = vrot.slane %v890_v38, 2 }
 0x173   : > { %v817_v40 = vpop.f32.mrf.mxu2 }
 0x174   : > { %v892_v41 = vmax.f32 %v890_v38, %v891_v39 }
 0x176   : > { %v893_v42 = vrot.slane %v892_v41, 1 }
 0x177   : > { %v401_v8 = vpop.trf.xlu0 }
 0x178   : > { %v894_v44 = vmax.f32 %v892_v41, %v893_v42  ;;  %1227 = vmatmul.msk.f32.gmra.mxu0 %vm413_vm0, %v401_v8 }
 0x17a   : > { %v895_v45 = vmax.f32 %v1720_v43, %v894_v44 }
 0x17b   : > { %v820_v46 = vpop.f32.mrf.mxu2 }
 0x17c   : > { %v900_v47 = vperm.slane %v895_v45, 0  ;;  %1004 = vst [vmem:[#allocation3 + $0x1] sm:$0x1] %v895_v45  ;;  %v896_v12 = vsub.f32 %v1720_v43, %v895_v45 }
 0x17e   : > { %v903_v48 = vsub.f32 %v811_v28, %v900_v47  ;;  %v904_v49 = vsub.f32 -1e+30, %v900_v47  ;;  %v902_v50 = vsub.f32 %v808_v24, %v900_v47  ;;  %v897_v18 = vmul.f32 1.442695, %v896_v12 }
 0x17f   : > { %v402_v14 = vpop.trf.xlu0 }
 0x180   : > { %v920_v51 = vmul.f32 1.442695, %v903_v48  ;;  %v922_v52 = vmul.f32 1.442695, %v904_v49  ;;  %v918_v53 = vmul.f32 1.442695, %v902_v50  ;;  %1228 = vmatmul.msk.f32.gmra.mxu0 %vm413_vm0, %v402_v14 }
 0x182   : > { %1345 = vpow2.f32 %v920_v51 }
 0x183   : > { %1347 = vpow2.f32 %v922_v52  ;;  %v823_v54 = vpop.f32.mrf.mxu2 }
 0x184   : > { %1349 = vpow2.f32 %v918_v53 }
 0x185   : > { %1351 = vpow2.f32 %v897_v18 }
 0x187   : > { %v403_v22 = vpop.trf.xlu0 }
 0x188   : > { %v1346_v55 = vpop.eup %1345  ;;  %1229 = vmatmul.msk.f32.gmra.mxu0 %vm413_vm0, %v403_v22 }
 0x189   : > { %v1348_v56 = vpop.eup %1347 }
 0x18a   : > { %v1350_v57 = vpop.eup %1349  ;;  %976 = vmatpush.msrb.mxu3 %v1348_v56 }
 0x18b   : > { %v826_v58 = vpop.f32.mrf.mxu2  ;;  %v953_v59 = vadd.f32 %v1350_v57, %v1346_v55  ;;  %v1732_v26 = vpop.eup %1351 }
 0x18c   : > { %977 = vmatpush.msrb.mxu3 %v1348_v56  ;;  %v952_v30 = vmul.f32 %v1732_v26, %v951_v27 }
 0x18d   : > { %v954_v61 = vadd.f32 %v1348_v56, %v953_v59  ;;  %v575_v59 = vld [vmem:[#allocation3] sm:$0x1] }
 0x18e   : > { %978 = vmatpush.msrb.mxu3 %v1348_v56 }
 0x18f   : > { %v955_v62 = vadd.f32 %v1348_v56, %v954_v61  ;;  %v404_v33 = vpop.trf.xlu0 }
 0x190   : > { %979 = vmatpush.msrb.mxu3 %v1348_v56  ;;  %1230 = vmatmul.msk.f32.gmra.mxu0 %vm413_vm0, %v404_v33 }
 0x191   : > { %v956_v63 = vadd.f32 %v1348_v56, %v955_v62 }
 0x192   : > { %980 = vmatpush.msrb.mxu3 %v1348_v56 }
 0x193   : > { %v829_v0 = vpop.f32.mrf.mxu2  ;;  %v957_v1 = vadd.f32 %v1348_v56, %v956_v63 }
 0x194   : > { %981 = vmatpush.msrb.mxu3 %v1348_v56 }
 0x195   : > { %v958_v3 = vadd.f32 %v1348_v56, %v957_v1 }
 0x196   : > { %982 = vmatpush.msrb.mxu3 %v1348_v56 }
 0x197   : > { %v959_v4 = vadd.f32 %v1348_v56, %v958_v3  ;;  %v405_v36 = vpop.trf.xlu0 }
 0x198   : > { %983 = vmatpush.msrb.mxu3 %v1348_v56  ;;  %1231 = vmatmul.msk.f32.gmra.mxu0 %vm413_vm0, %v405_v36 }
 0x199   : > { %v960_v5 = vadd.f32 %v1348_v56, %v959_v4 }
 0x19a   : > { %984 = vmatpush.msrb.mxu3 %v1348_v56 }
 0x19b   : > { %v832_v6 = vpop.f32.mrf.mxu2  ;;  %v961_v7 = vadd.f32 %v1348_v56, %v960_v5 }
 0x19c   : > { %985 = vmatpush.msrb.mxu3 %v1348_v56 }
 0x19d   : > { %v962_v9 = vadd.f32 %v1348_v56, %v961_v7 }
 0x19e   : > { %986 = vmatpush.msrb.mxu3 %v1348_v56 }
 0x19f   : > { %v963_v10 = vadd.f32 %v1348_v56, %v962_v9  ;;  %v406_v38 = vpop.trf.xlu0 }
 0x1a0   : > { %987 = vmatpush.msrb.mxu3 %v1348_v56  ;;  %1232 = vmatmul.msk.f32.gmra.mxu0 %vm413_vm0, %v406_v38 }
 0x1a1   : > { %v964_v11 = vadd.f32 %v1348_v56, %v963_v10 }
 0x1a2   : > { %988 = vmatpush.msrb.mxu3 %v1348_v56 }
 0x1a3   : > { %v835_v13 = vpop.f32.mrf.mxu3  ;;  %v965_v15 = vadd.f32 %v1348_v56, %v964_v11 }
 0x1a4   : > { %989 = vmatpush.msrb.mxu3 %v1348_v56 }
 0x1a5   : > { %v966_v16 = vadd.f32 %v1348_v56, %v965_v15 }
 0x1a6   : > { %990 = vmatpush.msrb.mxu3 %v1346_v55 }
 0x1a7   : > { %v967_v19 = vadd.f32 %v1348_v56, %v966_v16  ;;  %v407_v40 = vpop.trf.xlu0 }
 0x1a8   : > { %991 = vmatpush.msrb.mxu3 %v1350_v57  ;;  %1233 = vmatmul.msk.f32.vlgmr.msra.gmra.mxu1 %vm413_vm0, %v407_v40 }
 0x1a9   : > { %992 = vmatmul.f32.vlgmr.msrb.gmra.mxu3 %v1240_v17  ;;  %v968_v20 = vrot.slane %v967_v19, 4 }
 0x1ab   : > { %v838_v21 = vpop.f32.mrf.mxu3  ;;  %v969_v23 = vadd.f32 %v968_v20, %v967_v19 }
 0x1ad   : > { %v970_v24 = vrot.slane %v969_v23, 2 }
 0x1af   : > { %v971_v25 = vadd.f32 %v970_v24, %v969_v23  ;;  %v408_v43 = vpop.trf.xlu0 }
 0x1b0   : > { %1234 = vmatmul.msk.f32.gmra.mxu1 %vm413_vm0, %v408_v43  ;;  %v999_v43 = vperm.slane %v1732_v26, 0 }
 0x1b1   : > { %v972_v28 = vrot.slane %v971_v25, 1 }
 0x1b3   : > { %v841_v29 = vpop.f32.mrf.mxu3  ;;  %v973_v31 = vadd.f32 %v972_v28, %v971_v25 }
 0x1b5   : > { %v974_v32 = vadd.f32 %v973_v31, %v952_v30 }
 0x1b7   : > { %975 = vst [vmem:[#allocation4 + $0x1] sm:$0x1] %v974_v32  ;;  %v409_v50 = vpop.trf.xlu0 }
 0x1b8   : > { %1235 = vmatmul.msk.f32.gmra.mxu1 %vm413_vm0, %v409_v50 }
 0x1bb   : > { %v844_v34 = vpop.f32.mrf.mxu3 }
 0x1bc   : > { %v380_v34 = vld [vmem:[%s273_s18] sm:$0xff] }
 0x1be   : > { %v1009_v15 = vld [vmem:[#allocation4 + $0x1] sm:$0x1] }
 0x1bf   : > { %v410_v55 = vpop.trf.xlu0  ;;  %v1036_v40 = vand.u32 2147483648, %v1009_v15  ;;  %vm1030_vm2 = vweird.f32 %v1009_v15 }
 0x1c0   : > { %1236 = vmatmul.msk.f32.gmra.mxu1 %vm413_vm0, %v410_v55 }
 0x1c3   : > { %v847_v35 = vpop.f32.mrf.mxu3 }
 0x1c7   : > { %v411_v61 = vpop.trf.xlu0 }
 0x1c8   : > { %1237 = vmatmul.msk.f32.gmra.mxu1 %vm413_vm0, %v411_v61 }
 0x1cb   : > { %v850_v37 = vpop.f32.mrf.mxu3 }
 0x1cf   : > { %v412_v6 = vpop.trf.xlu0 }
 0x1d0   : > { %1238 = vmatmul.msk.f32.gmra.mxu1 %vm413_vm0, %v412_v6 }
 0x1d3   : > { %v853_v39 = vpop.f32.mrf.mxu3 }
 0x1d5   : > { %v479_v41 = vpop.f32.mrf.mxu0 }
 0x1d6   : > { %v576_v42 = vmax.f32 %v479_v41, -1e+30 }
 0x1d8   : > { %v580_v45 = vmax.f32 %v576_v42, -1e+30 }
 0x1da   : > { %v584_v48 = vmax.f32 %v580_v45, -1e+30 }
 0x1dd   : > { %v482_v44 = vpop.f32.mrf.mxu0 }
 0x1de   : > { %v577_v46 = vmax.f32 %v482_v44, -1e+30 }
 0x1e0   : > { %v581_v47 = vmax.f32 %v577_v46, -1e+30  ;;  %v1037_v46 = vor.u32 1.1754944e-38, %v1036_v40 }
 0x1e2   : > { %v585_v49 = vmax.f32 %v581_v47, -1e+30 }
 0x1e4   : > { %v588_v51 = vmax.f32 %v584_v48, %v585_v49 }
 0x1e5   : > { %v485_v13 = vpop.f32.mrf.mxu0 }
 0x1e6   : > { %v590_v52 = vmax.f32 %v588_v51, -1e+30  ;;  %v652_v51 = vld [vmem:[#allocation4] sm:$0x1] }
 0x1e8   : > { %v591_v53 = vrot.slane %v590_v52, 4 }
 0x1ea   : > { %v592_v54 = vmax.f32 %v590_v52, %v591_v53  ;;  %v1001_v52 = vmul.f32 0.0, %v999_v43 }
 0x1ec   : > { %v593_v56 = vrot.slane %v592_v54, 2 }
 0x1ed   : > { %v488_v19 = vpop.f32.mrf.mxu0 }
 0x1ee   : > { %v594_v57 = vmax.f32 %v592_v54, %v593_v56 }
 0x1f0   : > { %v595_v58 = vrot.slane %v594_v57, 1 }
 0x1f2   : > { %v596_v60 = vmax.f32 %v594_v57, %v595_v58 }
 0x1f4   : > { %v597_v62 = vmax.f32 %v575_v59, %v596_v60 }
 0x1f5   : > { %v491_v27 = vpop.f32.mrf.mxu0 }
 0x1f6   : > { %v602_v63 = vperm.slane %v597_v62, 0  ;;  %704 = vst [vmem:[#allocation3] sm:$0x1] %v597_v62  ;;  %v598_v30 = vsub.f32 %v575_v59, %v597_v62 }
 0x1f8   : > { %v605_v0 = vsub.f32 %v482_v44, %v602_v63  ;;  %v606_v1 = vsub.f32 -1e+30, %v602_v63  ;;  %v604_v2 = vsub.f32 %v479_v41, %v602_v63  ;;  %v599_v35 = vmul.f32 1.442695, %v598_v30 }
 0x1f9   : > { %v1034_v41 = vand.u32 2147483647, %v1009_v15 }
 0x1fa   : > { %v622_v3 = vmul.f32 1.442695, %v605_v0  ;;  %v624_v4 = vmul.f32 1.442695, %v606_v1  ;;  %v620_v5 = vmul.f32 1.442695, %v604_v2 }
 0x1fb   : > { %vm1035_vm4 = vcmp.eq.f32.partialorder %v1034_v41, 8.507059e+37 }
 0x1fc   : > { %1353 = vpow2.f32 %v622_v3 }
 0x1fd   : > { %1355 = vpow2.f32 %v624_v4  ;;  %v494_v36 = vpop.f32.mrf.mxu0 }
 0x1fe   : > { %1357 = vpow2.f32 %v620_v5 }
 0x1ff   : > { %1359 = vrcp.f32 %v1009_v15 }
 0x200   : > { %1361 = vpow2.f32 %v599_v35 }
 0x202   : > { %v1354_v7 = vpop.eup %1353 }
 0x203   : > { %v1356_v8 = vpop.eup %1355 }
 0x204   : > { %v1358_v9 = vpop.eup %1357  ;;  %677 = vmatpush.msrb.mxu1 %v1356_v8 }
 0x205   : > { %v654_v10 = vadd.f32 %v1358_v9, %v1354_v7  ;;  %v1360_v21 = vpop.eup %1359  ;;  %v497_v47 = vpop.f32.mrf.mxu0 }
 0x206   : > { %678 = vmatpush.msrb.mxu1 %v1356_v8  ;;  %v1026_v24 = vmul.f32 %v1360_v21, %v1009_v15  ;;  %vm1031_vm1 = vweird.f32 %v1360_v21  ;;  %v1362_v49 = vpop.eup %1361 }
 0x207   : > { %v655_v11 = vadd.f32 %v1356_v8, %v654_v10  ;;  %vm1032_vm3 = vmor %vm1030_vm2, %vm1031_vm1  ;;  %v653_v57 = vmul.f32 %v1362_v49, %v652_v51  ;;  %v699_v13 = vperm.slane %v1362_v49, 0 }
 0x208   : > { %679 = vmatpush.msrb.mxu1 %v1356_v8  ;;  %v1027_v28 = vsub.f32 1.0, %v1026_v24 }
 0x209   : > { %v656_v12 = vadd.f32 %v1356_v8, %v655_v11 }
 0x20a   : > { %680 = vmatpush.msrb.mxu1 %v1356_v8  ;;  %v1028_v32 = vmul.f32 %v1360_v21, %v1027_v28 }
 0x20b   : > { %v657_v14 = vadd.f32 %v1356_v8, %v656_v12 }
 0x20c   : > { %681 = vmatpush.msrb.mxu1 %v1356_v8  ;;  %v1029_v38 = vadd.f32 %v1360_v21, %v1028_v32 }
 0x20d   : > { %v658_v16 = vadd.f32 %v1356_v8, %v657_v14  ;;  %v500_v26 = vpop.f32.mrf.mxu0 }
 0x20e   : > { %682 = vmatpush.msrb.mxu1 %v1356_v8  ;;  %v1033_v44 = vsel %vm1032_vm3, %v1360_v21, %v1029_v38 }
 0x20f   : > { %v659_v17 = vadd.f32 %v1356_v8, %v658_v16  ;;  %v1038_v50 = vsel %vm1035_vm4, %v1037_v46, %v1033_v44 }
 0x210   : > { %683 = vmatpush.msrb.mxu1 %v1356_v8  ;;  %v1045_v56 = vperm.slane %v1038_v50, 0 }
 0x211   : > { %v660_v18 = vadd.f32 %v1356_v8, %v659_v17  ;;  %v701_v17 = vmul.f32 0.0, %v699_v13 }
 0x212   : > { %684 = vmatpush.msrb.mxu1 %v1356_v8 }
 0x213   : > { %v661_v20 = vadd.f32 %v1356_v8, %v660_v18 }
 0x214   : > { %685 = vmatpush.msrb.mxu1 %v1356_v8 }
 0x215   : > { %v662_v22 = vadd.f32 %v1356_v8, %v661_v20  ;;  %v503_v61 = vpop.f32.mrf.mxu0 }
 0x216   : > { %686 = vmatpush.msrb.mxu1 %v1356_v8 }
 0x217   : > { %v663_v23 = vadd.f32 %v1356_v8, %v662_v22 }
 0x218   : > { %687 = vmatpush.msrb.mxu1 %v1356_v8 }
 0x219   : > { %v664_v25 = vadd.f32 %v1356_v8, %v663_v23 }
 0x21a   : > { %688 = vmatpush.msrb.mxu1 %v1356_v8 }
 0x21b   : > { %v665_v29 = vadd.f32 %v1356_v8, %v664_v25 }
 0x21c   : > { %689 = vmatpush.msrb.mxu1 %v1356_v8 }
 0x21d   : > { %v666_v31 = vadd.f32 %v1356_v8, %v665_v29  ;;  %v506_v62 = vpop.f32.mrf.mxu0 }
 0x21e   : > { %690 = vmatpush.msrb.mxu1 %v1356_v8 }
 0x21f   : > { %v667_v33 = vadd.f32 %v1356_v8, %v666_v31 }
 0x220   : > { %691 = vmatpush.msrb.mxu1 %v1354_v7 }
 0x221   : > { %v668_v37 = vadd.f32 %v1356_v8, %v667_v33 }
 0x222   : > { %692 = vmatpush.msrb.mxu1 %v1358_v9 }
 0x223   : > { %693 = vmatmul.f32.vlgmr.msrb.gmra.mxu1 %v380_v34  ;;  %v669_v39 = vrot.slane %v668_v37, 4 }
 0x225   : > { %v670_v42 = vadd.f32 %v669_v39, %v668_v37  ;;  %v509_v63 = vpop.f32.mrf.mxu1 }
 0x227   : > { %v671_v45 = vrot.slane %v670_v42, 2 }
 0x229   : > { %v672_v48 = vadd.f32 %v671_v45, %v670_v42 }
 0x22b   : > { %v673_v53 = vrot.slane %v672_v48, 1 }
 0x22c   : > { %v993_v54 = vpop.f32.mrf.mxu3 }
 0x22d   : > { %v1002_v55 = vadd.f32 %v1001_v52, %v993_v54  ;;  %v674_v58 = vadd.f32 %v673_v53, %v672_v48  ;;  %v512_v0 = vpop.f32.mrf.mxu1 }
 0x22f   : > { %v1049_v59 = vmul.f32 %v1045_v56, %v1002_v55  ;;  %v675_v60 = vadd.f32 %v674_v58, %v653_v57 }
 0x231   : > { %1051 = vst [vmem:[%s1748_s24 + $0x8] sm:$0xff] %v1049_v59 }
 0x232   : > { %676 = vst [vmem:[#allocation4] sm:$0x1] %v675_v60 }
 0x235   : > { %v515_v1 = vpop.f32.mrf.mxu1 }
 0x239   : > { %v1008_v5 = vld [vmem:[#allocation4] sm:$0x1] }
 0x23a   : > { %1363 = vrcp.f32 %v1008_v5  ;;  %v1021_v11 = vand.u32 2147483648, %v1008_v5  ;;  %vm1015_vm6 = vweird.f32 %v1008_v5  ;;  %v1019_v12 = vand.u32 2147483647, %v1008_v5 }
 0x23c   : > { %v1022_v15 = vor.u32 1.1754944e-38, %v1021_v11  ;;  %vm1020_vm8 = vcmp.eq.f32.partialorder %v1019_v12, 8.507059e+37 }
 0x23d   : > { %v518_v2 = vpop.f32.mrf.mxu1 }
 0x240   : > { %v1364_v6 = vpop.eup %1363 }
 0x241   : > { %v1011_v7 = vmul.f32 %v1364_v6, %v1008_v5  ;;  %vm1016_vm5 = vweird.f32 %v1364_v6 }
 0x242   : > { %vm1017_vm7 = vmor %vm1015_vm6, %vm1016_vm5 }
 0x243   : > { %v1012_v8 = vsub.f32 1.0, %v1011_v7 }
 0x245   : > { %v521_v3 = vpop.f32.mrf.mxu1  ;;  %v1013_v9 = vmul.f32 %v1364_v6, %v1012_v8 }
 0x247   : > { %v1014_v10 = vadd.f32 %v1364_v6, %v1013_v9 }
 0x249   : > { %v1018_v14 = vsel %vm1017_vm7, %v1364_v6, %v1014_v10 }
 0x24a   : > { %v1023_v16 = vsel %vm1020_vm8, %v1022_v15, %v1018_v14 }
 0x24b   : > { %v1044_v20 = vperm.slane %v1023_v16, 0 }
 0x24d   : > { %v524_v4 = vpop.f32.mrf.mxu1 }
 0x2a0   : > { %v694_v18 = vpop.f32.mrf.mxu1 }
 0x2a1   : > { %v702_v19 = vadd.f32 %v701_v17, %v694_v18 }
 0x2a3   : > { %v1048_v21 = vmul.f32 %v1044_v20, %v702_v19 }
 0x2a5   : > { %1050 = vst [vmem:[%s1748_s24] sm:$0xff] %v1048_v21 }
 0x2a6   : > { %1482 = shalt.err (!%p1479_p13)
}
 0x2a7   : > { %s1548_s5 = smov 128   ;;  %s1549_s10 = smov 8  }
 0x2a8   : > { %1272 = dma.vmem_to_hbm [thread:$0]  (%p1625_p9), %s1067_s4, 256, %s1069_s21, %s1053_s15, %s1548_s5, %s1548_s5, %s1549_s10  }
 0x2a9 PF: > { %s1817_s19 = sld [smem:[#allocation16_spill]]  ;;  %p1285_p0 = pnand %p1209_p12, %p1632_p11 }
 0x2aa   : > { %s1819_s16 = sld [smem:[#allocation19_spill]] }
 0x2ab   : > { %p1286_p1 = pneg %p1285_p0 }
 0x2af   : > { %s1083_s14 = sand.u32 1, %s1817_s19  }
 0x2b0   : > { %s1084_s26 = scalar_lea.sflag [#allocation8], %s1083_s14 }
 0x2b1   : > { %1516 = dma.done.wait (%p1286_p1), %s1084_s26, 256  }
 0x2b2   : > { %1518 = vsyncadd (%p1286_p1), %s1084_s26, 4294967040  ;;  %s22_s17 = sadd.s32 1, %s1819_s16   ;;  %s1820_s20 = sld [smem:[#allocation17_spill]] }
 0x2b3   : > { %p19_p2 = scmp.ge.s32.totalorder %s22_s17, 4   ;;  %s1821_s14 = sld [smem:[#allocation21_spill]] }
 0x2b4   : > { %s1822_s15 = sld [smem:[#allocation18_spill]]  ;;  %s1824_s12 = smov %s1525_s13 }
 0x2b5   : > { %s1823_s16 = sld [smem:[#allocation20_spill]]  ;;  %21 = sbr.rel (!%p19_p2) target bundleno = 10 (0xa), region = 115 }
 0x2b8   : > { %s1825_s13 = smov %s1820_s20 }
 0x2ba   :  { %1090 = vsyncpa [#allocation7], 1 }
 0x2bb   :  { %1092 = vsyncpa [#allocation7 + $0x1], 1 }
 0x2bc   :  { %1093 = vsyncpa [#allocation10], 1 }
 0x2bd   :  { %1095 = vsyncpa [#allocation10 + $0x1], 1 }
 0x2be   :  { %1096 = vsyncpa [#allocation8], 1 }
 0x2bf   :  { %1098 = vsyncpa [#allocation8 + $0x1], 1 }

</bundles_post_ra>
